<compile_context>
chip_gen: v5e
topology: v5e:2x2
jax: 0.10.0
libtpu: 0.0.40
codegen_flags: <defaults>
</compile_context>

<pallas_src>
import functools

import jax
import jax.numpy as jnp
from jax import lax
from jax.experimental import pallas as pl
from jax.experimental.pallas import tpu as pltpu

EPS = 1e-5


# --------------------------------------------------------------------------- #
# Kernels
# --------------------------------------------------------------------------- #
def _conv3x3_kernel(xp_ref, w_ref, mask_ref, scale_ref, shift_ref,
                    y_ref, s_ref, q_ref,
                    act_ref, patch_ref,
                    *, W, fuse_input_bn_relu, compute_dtype):
    """One image per grid step.

    xp_ref    : (1, Cin, HW + 2*W + 2)  flattened spatial, padded by W+1 slots/side
    w_ref     : (Cout, 9*Cin)           im2col weights (tap-major, channel-minor)
    mask_ref  : (9, HW)                 per-tap validity mask (implements zero padding)
    scale/shift: (Cin, 1)               folded BN affine applied to the *input*
    y_ref     : (1, Cout, HW)           raw conv output (pre-BN), lane-dense
    s_ref/q_ref: (1, Cout, 1)           per-image per-channel sum / sum-of-squares
    act_ref   : (Cin, HWp) f32 scratch
    patch_ref : (9*Cin, HW) scratch in compute dtype (im2col patch)
    """
    Cin = xp_ref.shape[1]
    HW = y_ref.shape[2]

    x_row = xp_ref[0]                                     # (Cin, HWp) f32
    if fuse_input_bn_relu:
        # BN pre-folded into a single FMA + ReLU, elementwise in f32 (lane-dense).
        x_row = jnp.maximum(x_row * scale_ref[...] + shift_ref[...], 0.0)
    act_ref[...] = x_row

    # im2col: 9 lane-shifted windows, masked where the 3x3 tap falls in the
    # zero-padding halo, packed into one (9*Cin, HW) patch.
    for k in range(9):
        ky, kx = k // 3, k % 3
        start = ky * W + kx                               # static offset in [0, 2W+2]
        win = act_ref[:, start:start + HW]                # (Cin, HW)
        patch_ref[k * Cin:(k + 1) * Cin, :] = (
            win * mask_ref[k:k + 1, :]).astype(compute_dtype)

    # Single MXU contraction (K = 9*Cin), f32 accumulation.
    y = jnp.dot(w_ref[...], patch_ref[...],
                preferred_element_type=jnp.float32)       # (Cout, HW)
    y_ref[0] = y.astype(y_ref.dtype)

    # Per-channel partial batch statistics (lane reductions -> XLU).
    s_ref[0] = jnp.sum(y, axis=1, keepdims=True)          # (Cout, 1)
    q_ref[0] = jnp.sum(y * y, axis=1, keepdims=True)      # (Cout, 1)


def _affine_relu_kernel(x_ref, scale_ref, shift_ref, o_ref):
    # Final BN (folded to scale/shift) + ReLU, lane-dense elementwise.
    o_ref[...] = jnp.maximum(
        x_ref[...] * scale_ref[...] + shift_ref[...], 0.0).astype(o_ref.dtype)


# --------------------------------------------------------------------------- #
# pallas_call wrappers
# --------------------------------------------------------------------------- #
def _compiler_params():
    return pltpu.CompilerParams(
        dimension_semantics=("parallel",),          # batch axis -> megacore on v7x
        vmem_limit_bytes=32 * 1024 * 1024,          # explicit, safe on v5e/v6e/v7x
    )


def _conv3x3_call(x_flat, w_mat, masks, scale, shift, *, W,
                  fuse_input_bn_relu, compute_dtype):
    """x_flat: (N, Cin, H*W) f32 -> (conv_out (N, Cout, H*W), sums, sumsqs)."""
    N, Cin, HW = x_flat.shape
    Cout = w_mat.shape[0]
    HWp = HW + 2 * W + 2

    # Margin padding so every shifted window is a valid static slice; the margin
    # values never reach the result (the tap masks zero those positions).
    xp = jnp.pad(x_flat, ((0, 0), (0, 0), (W + 1, W + 1)))

    kern = functools.partial(_conv3x3_kernel, W=W,
                             fuse_input_bn_relu=fuse_input_bn_relu,
                             compute_dtype=compute_dtype)

    y, s, q = pl.pallas_call(
        kern,
        grid=(N,),
        in_specs=[
            pl.BlockSpec((1, Cin, HWp), lambda n: (n, 0, 0)),
            pl.BlockSpec((Cout, 9 * Cin), lambda n: (0, 0)),
            pl.BlockSpec((9, HW), lambda n: (0, 0)),
            pl.BlockSpec((Cin, 1), lambda n: (0, 0)),
            pl.BlockSpec((Cin, 1), lambda n: (0, 0)),
        ],
        out_specs=(
            pl.BlockSpec((1, Cout, HW), lambda n: (n, 0, 0)),
            pl.BlockSpec((1, Cout, 1), lambda n: (n, 0, 0)),
            pl.BlockSpec((1, Cout, 1), lambda n: (n, 0, 0)),
        ),
        out_shape=(
            jax.ShapeDtypeStruct((N, Cout, HW), jnp.float32),
            jax.ShapeDtypeStruct((N, Cout, 1), jnp.float32),
            jax.ShapeDtypeStruct((N, Cout, 1), jnp.float32),
        ),
        scratch_shapes=[
            pltpu.VMEM((Cin, HWp), jnp.float32),
            pltpu.VMEM((9 * Cin, HW), compute_dtype),
        ],
        compiler_params=_compiler_params(),
    )(xp, w_mat, masks, scale, shift)
    return y, s, q


def _affine_relu_call(y_flat, scale, shift):
    N, C, HW = y_flat.shape
    return pl.pallas_call(
        _affine_relu_kernel,
        grid=(N,),
        in_specs=[
            pl.BlockSpec((1, C, HW), lambda n: (n, 0, 0)),
            pl.BlockSpec((C, 1), lambda n: (0, 0)),
            pl.BlockSpec((C, 1), lambda n: (0, 0)),
        ],
        out_specs=pl.BlockSpec((1, C, HW), lambda n: (n, 0, 0)),
        out_shape=jax.ShapeDtypeStruct((N, C, HW), jnp.float32),
        compiler_params=_compiler_params(),
    )(y_flat, scale, shift)


# --------------------------------------------------------------------------- #
# Host-side glue
# --------------------------------------------------------------------------- #
def _tap_masks(H, W):
    """(9, H*W) validity mask per 3x3 tap: 0 where the tap reads the zero halo."""
    p = jnp.arange(H * W)
    i, j = p // W, p % W
    rows = []
    for k in range(9):
        dy, dx = k // 3 - 1, k % 3 - 1
        rows.append((i + dy >= 0) & (i + dy < H) & (j + dx >= 0) & (j + dx < W))
    return jnp.stack(rows).astype(jnp.float32)


def _bn_fold(s, q, count, gamma, beta):
    """Finalize global batch stats and fold BN into (scale, shift). O(C) glue."""
    mean = jnp.sum(s, axis=(0, 2)) / count
    ex2 = jnp.sum(q, axis=(0, 2)) / count
    var = ex2 - mean * mean                      # biased, as in torch training-mode BN
    scale = gamma * lax.rsqrt(var + EPS)
    shift = beta - mean * scale
    return scale[:, None], shift[:, None]


def double_conv_helper(x_nchw, params, *, compute_dtype=jnp.float32):
    """x_nchw: (N, Cin, H, W) f32 (PyTorch layout). Returns (N, Cout, H, W).

    compute_dtype=jnp.bfloat16 feeds bf16 operands to the MXU (f32 accumulate,
    f32 elementwise) — recommended on v6e/v7x.
    """
    w1, cb1, g1, be1, w2, cb2, g2, be2 = params
    # Conv biases are mathematically no-ops under training-mode BN (absorbed by the
    # mean subtraction, variance unchanged) -> folded away per the perf review.
    del cb1, cb2

    N, Cin, H, W = x_nchw.shape
    Cmid, Cout = w1.shape[0], w2.shape[0]
    HW = H * W

    masks = _tap_masks(H, W)
    # PyTorch (Cout, Cin, 3, 3) -> (Cout, ky, kx, Cin) -> (Cout, 9*Cin), tap-major.
    w1m = jnp.transpose(w1, (0, 2, 3, 1)).reshape(Cmid, 9 * Cin).astype(compute_dtype)
    w2m = jnp.transpose(w2, (0, 2, 3, 1)).reshape(Cout, 9 * Cmid).astype(compute_dtype)

    # NCHW is already channel-major / spatial-minor: flattening is free plumbing.
    x_flat = x_nchw.reshape(N, Cin, HW).astype(jnp.float32)

    # conv1 (no input activation): raw output + partial stats.
    ident_s = jnp.ones((Cin, 1), jnp.float32)
    ident_b = jnp.zeros((Cin, 1), jnp.float32)
    y1, s1, q1 = _conv3x3_call(x_flat, w1m, masks, ident_s, ident_b, W=W,
                               fuse_input_bn_relu=False, compute_dtype=compute_dtype)
    scale1, shift1 = _bn_fold(s1, q1, N * HW, g1, be1)

    # BN1+ReLU fused into conv2's input path; conv2 raw output + partial stats.
    y2, s2, q2 = _conv3x3_call(y1, w2m, masks, scale1, shift1, W=W,
                               fuse_input_bn_relu=True, compute_dtype=compute_dtype)
    scale2, shift2 = _bn_fold(s2, q2, N * HW, g2, be2)

    # Final BN2 + ReLU.
    out = _affine_relu_call(y2, scale2, shift2)
    return out.reshape(N, Cout, H, W)


# --------------------------------------------------------------------------- #
# Pure-JAX reference (mirrors the PyTorch module: conv+bias, training-mode BN)
# --------------------------------------------------------------------------- #
def ref_forward(x, params):
    w1, cb1, g1, be1, w2, cb2, g2, be2 = params

    def conv(y, w, b):
        y = lax.conv_general_dilated(y, w, (1, 1), 'SAME',
                                     dimension_numbers=('NCHW', 'OIHW', 'NCHW'))
        return y + b[None, :, None, None]

    def bn_relu(y, g, be):
        m = y.mean(axis=(0, 2, 3), keepdims=True)
        v = ((y - m) ** 2).mean(axis=(0, 2, 3), keepdims=True)   # biased var
        yn = (y - m) / jnp.sqrt(v + EPS)
        return jnp.maximum(yn * g[None, :, None, None] + be[None, :, None, None], 0.0)

    y = bn_relu(conv(x, w1, cb1), g1, be1)
    y = bn_relu(conv(y, w2, cb2), g2, be2)
    return y


# --------------------------------------------------------------------------- #
if __name__ == "__main__":
    N, Cin, H, W = 2, 4, 16, 16
    Cout = 8
    Cmid = Cout      # mid_channels=None -> mid_channels = out_channels

    key = jax.random.PRNGKey(0)
    k = jax.random.split(key, 5)
    w1 = 0.1 * jax.random.normal(k[0], (Cmid, Cin, 3, 3), jnp.float32)
    cb1 = 0.1 * jax.random.normal(k[1], (Cmid,), jnp.float32)
    g1 = jnp.ones((Cmid,), jnp.float32)
    be1 = jnp.zeros((Cmid,), jnp.float32)
    w2 = 0.1 * jax.random.normal(k[2], (Cout, Cmid, 3, 3), jnp.float32)
    cb2 = 0.1 * jax.random.normal(k[3], (Cout,), jnp.float32)
    g2 = jnp.ones((Cout,), jnp.float32)
    be2 = jnp.zeros((Cout,), jnp.float32)
    params = (w1, cb1, g1, be1, w2, cb2, g2, be2)

    x = jax.random.normal(k[4], (N, Cin, H, W), jnp.float32)

    ref = jax.block_until_ready(ref_forward(x, params))

    # f32 MXU path: exact semantics.
    out = jax.block_until_ready(double_conv_helper(x, params))
    assert out.shape == (N, Cout, H, W)
    assert jnp.allclose(out, ref, rtol=1e-4, atol=1e-4), \
        f"f32 max abs diff {jnp.max(jnp.abs(out - ref))}"

    # bf16 MXU operands (v6e/v7x recommendation), f32 accumulate/elementwise.
    out_bf16 = jax.block_until_ready(
        double_conv_helper(x, params, compute_dtype=jnp.bfloat16))
    assert jnp.allclose(out_bf16, ref, rtol=5e-2, atol=5e-2), \
        f"bf16 max abs diff {jnp.max(jnp.abs(out_bf16 - ref))}"

    print("KERNEL_OK")
</pallas_src>

<mosaic_0001>
module attributes {stable_mosaic.version = 11 : i64} {
  func.func @_conv3x3_kernel(%arg0: i32, %arg1: memref<1x4x290xf32, #tpu.memory_space<vmem>>, %arg2: memref<8x36xf32, #tpu.memory_space<vmem>>, %arg3: memref<9x256xf32, #tpu.memory_space<vmem>>, %arg4: memref<4x1xf32, #tpu.memory_space<vmem>>, %arg5: memref<4x1xf32, #tpu.memory_space<vmem>>, %arg6: memref<1x8x256xf32, #tpu.memory_space<vmem>>, %arg7: memref<1x8x1xf32, #tpu.memory_space<vmem>>, %arg8: memref<1x8x1xf32, #tpu.memory_space<vmem>>, %arg9: memref<4x290xf32, #tpu.memory_space<vmem>>, %arg10: memref<36x256xf32, #tpu.memory_space<vmem>>) attributes {dimension_semantics = [#tpu.dimension_semantics<parallel>], iteration_bounds = array<i64: 2>, scalar_prefetch = 0 : i64, scratch_operands = 2 : i64, tpu.core_type = #tpu.core_type<tc>, window_params = [{transform_indices = @transform_0, window_bounds = array<i64: 1, 4, 290>}, {pipeline_mode = #tpu.pipeline_mode<synchronous>, transform_indices = @transform_1, window_bounds = array<i64: 8, 36>}, {pipeline_mode = #tpu.pipeline_mode<synchronous>, transform_indices = @transform_2, window_bounds = array<i64: 9, 256>}, {pipeline_mode = #tpu.pipeline_mode<synchronous>, transform_indices = @transform_3, window_bounds = array<i64: 4, 1>}, {pipeline_mode = #tpu.pipeline_mode<synchronous>, transform_indices = @transform_4, window_bounds = array<i64: 4, 1>}, {transform_indices = @transform_5, window_bounds = array<i64: 1, 8, 256>}, {transform_indices = @transform_6, window_bounds = array<i64: 1, 8, 1>}, {transform_indices = @transform_7, window_bounds = array<i64: 1, 8, 1>}]} {
    %c0 = arith.constant 0 : index
    %c0_0 = arith.constant 0 : index
    %c0_1 = arith.constant 0 : index
    %0 = vector.load %arg1[%c0, %c0_0, %c0_1] : memref<1x4x290xf32, #tpu.memory_space<vmem>>, vector<1x4x290xf32>
    %1 = vector.shape_cast %0 : vector<1x4x290xf32> to vector<4x290xf32>
    %c0_2 = arith.constant 0 : index
    %c0_3 = arith.constant 0 : index
    %2 = vector.load %arg9[%c0_2, %c0_3] : memref<4x290xf32, #tpu.memory_space<vmem>>, vector<4x290xf32>
    tpu.vector_store %arg9[%c0_2, %c0_3], %1 {strides = array<i32>} : memref<4x290xf32, #tpu.memory_space<vmem>>, vector<4x290xf32>,
    %c0_4 = arith.constant 0 : index
    %c0_5 = arith.constant 0 : index
    %3 = vector.load %arg9[%c0_4, %c0_5] : memref<4x290xf32, #tpu.memory_space<vmem>>, vector<4x256xf32>
    %c0_6 = arith.constant 0 : index
    %c0_7 = arith.constant 0 : index
    %4 = vector.load %arg3[%c0_6, %c0_7] : memref<9x256xf32, #tpu.memory_space<vmem>>, vector<1x256xf32>
    %5 = vector.broadcast %4 : vector<1x256xf32> to vector<4x256xf32>
    %6 = arith.mulf %3, %5 : vector<4x256xf32>
    %c0_8 = arith.constant 0 : index
    %c0_9 = arith.constant 0 : index
    %7 = vector.load %arg10[%c0_8, %c0_9] : memref<36x256xf32, #tpu.memory_space<vmem>>, vector<4x256xf32>
    tpu.vector_store %arg10[%c0_8, %c0_9], %6 {strides = array<i32>} : memref<36x256xf32, #tpu.memory_space<vmem>>, vector<4x256xf32>,
    %c0_10 = arith.constant 0 : index
    %c1 = arith.constant 1 : index
    %8 = vector.load %arg9[%c0_10, %c1] : memref<4x290xf32, #tpu.memory_space<vmem>>, vector<4x256xf32>
    %c1_11 = arith.constant 1 : index
    %c0_12 = arith.constant 0 : index
    %9 = vector.load %arg3[%c1_11, %c0_12] : memref<9x256xf32, #tpu.memory_space<vmem>>, vector<1x256xf32>
    %10 = vector.broadcast %9 : vector<1x256xf32> to vector<4x256xf32>
    %11 = arith.mulf %8, %10 : vector<4x256xf32>
    %c4 = arith.constant 4 : index
    %c0_13 = arith.constant 0 : index
    %12 = vector.load %arg10[%c4, %c0_13] : memref<36x256xf32, #tpu.memory_space<vmem>>, vector<4x256xf32>
    tpu.vector_store %arg10[%c4, %c0_13], %11 {strides = array<i32>} : memref<36x256xf32, #tpu.memory_space<vmem>>, vector<4x256xf32>,
    %c0_14 = arith.constant 0 : index
    %c2 = arith.constant 2 : index
    %13 = vector.load %arg9[%c0_14, %c2] : memref<4x290xf32, #tpu.memory_space<vmem>>, vector<4x256xf32>
    %c2_15 = arith.constant 2 : index
    %c0_16 = arith.constant 0 : index
    %14 = vector.load %arg3[%c2_15, %c0_16] : memref<9x256xf32, #tpu.memory_space<vmem>>, vector<1x256xf32>
    %15 = vector.broadcast %14 : vector<1x256xf32> to vector<4x256xf32>
    %16 = arith.mulf %13, %15 : vector<4x256xf32>
    %c8 = arith.constant 8 : index
    %c0_17 = arith.constant 0 : index
    %17 = vector.load %arg10[%c8, %c0_17] : memref<36x256xf32, #tpu.memory_space<vmem>>, vector<4x256xf32>
    tpu.vector_store %arg10[%c8, %c0_17], %16 {strides = array<i32>} : memref<36x256xf32, #tpu.memory_space<vmem>>, vector<4x256xf32>,
    %c0_18 = arith.constant 0 : index
    %c16 = arith.constant 16 : index
    %18 = vector.load %arg9[%c0_18, %c16] : memref<4x290xf32, #tpu.memory_space<vmem>>, vector<4x256xf32>
    %c3 = arith.constant 3 : index
    %c0_19 = arith.constant 0 : index
    %19 = vector.load %arg3[%c3, %c0_19] : memref<9x256xf32, #tpu.memory_space<vmem>>, vector<1x256xf32>
    %20 = vector.broadcast %19 : vector<1x256xf32> to vector<4x256xf32>
    %21 = arith.mulf %18, %20 : vector<4x256xf32>
    %c12 = arith.constant 12 : index
    %c0_20 = arith.constant 0 : index
    %22 = vector.load %arg10[%c12, %c0_20] : memref<36x256xf32, #tpu.memory_space<vmem>>, vector<4x256xf32>
    tpu.vector_store %arg10[%c12, %c0_20], %21 {strides = array<i32>} : memref<36x256xf32, #tpu.memory_space<vmem>>, vector<4x256xf32>,
    %c0_21 = arith.constant 0 : index
    %c17 = arith.constant 17 : index
    %23 = vector.load %arg9[%c0_21, %c17] : memref<4x290xf32, #tpu.memory_space<vmem>>, vector<4x256xf32>
    %c4_22 = arith.constant 4 : index
    %c0_23 = arith.constant 0 : index
    %24 = vector.load %arg3[%c4_22, %c0_23] : memref<9x256xf32, #tpu.memory_space<vmem>>, vector<1x256xf32>
    %25 = vector.broadcast %24 : vector<1x256xf32> to vector<4x256xf32>
    %26 = arith.mulf %23, %25 : vector<4x256xf32>
    %c16_24 = arith.constant 16 : index
    %c0_25 = arith.constant 0 : index
    %27 = vector.load %arg10[%c16_24, %c0_25] : memref<36x256xf32, #tpu.memory_space<vmem>>, vector<4x256xf32>
    tpu.vector_store %arg10[%c16_24, %c0_25], %26 {strides = array<i32>} : memref<36x256xf32, #tpu.memory_space<vmem>>, vector<4x256xf32>,
    %c0_26 = arith.constant 0 : index
    %c18 = arith.constant 18 : index
    %28 = vector.load %arg9[%c0_26, %c18] : memref<4x290xf32, #tpu.memory_space<vmem>>, vector<4x256xf32>
    %c5 = arith.constant 5 : index
    %c0_27 = arith.constant 0 : index
    %29 = vector.load %arg3[%c5, %c0_27] : memref<9x256xf32, #tpu.memory_space<vmem>>, vector<1x256xf32>
    %30 = vector.broadcast %29 : vector<1x256xf32> to vector<4x256xf32>
    %31 = arith.mulf %28, %30 : vector<4x256xf32>
    %c20 = arith.constant 20 : index
    %c0_28 = arith.constant 0 : index
    %32 = vector.load %arg10[%c20, %c0_28] : memref<36x256xf32, #tpu.memory_space<vmem>>, vector<4x256xf32>
    tpu.vector_store %arg10[%c20, %c0_28], %31 {strides = array<i32>} : memref<36x256xf32, #tpu.memory_space<vmem>>, vector<4x256xf32>,
    %c0_29 = arith.constant 0 : index
    %c32 = arith.constant 32 : index
    %33 = vector.load %arg9[%c0_29, %c32] : memref<4x290xf32, #tpu.memory_space<vmem>>, vector<4x256xf32>
    %c6 = arith.constant 6 : index
    %c0_30 = arith.constant 0 : index
    %34 = vector.load %arg3[%c6, %c0_30] : memref<9x256xf32, #tpu.memory_space<vmem>>, vector<1x256xf32>
    %35 = vector.broadcast %34 : vector<1x256xf32> to vector<4x256xf32>
    %36 = arith.mulf %33, %35 : vector<4x256xf32>
    %c24 = arith.constant 24 : index
    %c0_31 = arith.constant 0 : index
    %37 = vector.load %arg10[%c24, %c0_31] : memref<36x256xf32, #tpu.memory_space<vmem>>, vector<4x256xf32>
    tpu.vector_store %arg10[%c24, %c0_31], %36 {strides = array<i32>} : memref<36x256xf32, #tpu.memory_space<vmem>>, vector<4x256xf32>,
    %c0_32 = arith.constant 0 : index
    %c33 = arith.constant 33 : index
    %38 = vector.load %arg9[%c0_32, %c33] : memref<4x290xf32, #tpu.memory_space<vmem>>, vector<4x256xf32>
    %c7 = arith.constant 7 : index
    %c0_33 = arith.constant 0 : index
    %39 = vector.load %arg3[%c7, %c0_33] : memref<9x256xf32, #tpu.memory_space<vmem>>, vector<1x256xf32>
    %40 = vector.broadcast %39 : vector<1x256xf32> to vector<4x256xf32>
    %41 = arith.mulf %38, %40 : vector<4x256xf32>
    %c28 = arith.constant 28 : index
    %c0_34 = arith.constant 0 : index
    %42 = vector.load %arg10[%c28, %c0_34] : memref<36x256xf32, #tpu.memory_space<vmem>>, vector<4x256xf32>
    tpu.vector_store %arg10[%c28, %c0_34], %41 {strides = array<i32>} : memref<36x256xf32, #tpu.memory_space<vmem>>, vector<4x256xf32>,
    %c0_35 = arith.constant 0 : index
    %c34 = arith.constant 34 : index
    %43 = vector.load %arg9[%c0_35, %c34] : memref<4x290xf32, #tpu.memory_space<vmem>>, vector<4x256xf32>
    %c8_36 = arith.constant 8 : index
    %c0_37 = arith.constant 0 : index
    %44 = vector.load %arg3[%c8_36, %c0_37] : memref<9x256xf32, #tpu.memory_space<vmem>>, vector<1x256xf32>
    %45 = vector.broadcast %44 : vector<1x256xf32> to vector<4x256xf32>
    %46 = arith.mulf %43, %45 : vector<4x256xf32>
    %c32_38 = arith.constant 32 : index
    %c0_39 = arith.constant 0 : index
    %47 = vector.load %arg10[%c32_38, %c0_39] : memref<36x256xf32, #tpu.memory_space<vmem>>, vector<4x256xf32>
    tpu.vector_store %arg10[%c32_38, %c0_39], %46 {strides = array<i32>} : memref<36x256xf32, #tpu.memory_space<vmem>>, vector<4x256xf32>,
    %c0_40 = arith.constant 0 : index
    %c0_41 = arith.constant 0 : index
    %48 = vector.load %arg2[%c0_40, %c0_41] : memref<8x36xf32, #tpu.memory_space<vmem>>, vector<8x36xf32>
    %c0_42 = arith.constant 0 : index
    %c0_43 = arith.constant 0 : index
    %49 = vector.load %arg10[%c0_42, %c0_43] : memref<36x256xf32, #tpu.memory_space<vmem>>, vector<36x256xf32>
    %cst = arith.constant dense<0.000000e+00> : vector<8x256xf32>
    %50 = tpu.matmul %48, %49, %cst {dimension_numbers = #tpu.dot_dimension_numbers<[1], [0], [0], [1], [0, 0, 1, 1], [], []>} : vector<8x36xf32>, vector<36x256xf32>, vector<8x256xf32> -> vector<8x256xf32>
    %c0_44 = arith.constant 0 : index
    %c0_45 = arith.constant 0 : index
    %c0_46 = arith.constant 0 : index
    %51 = vector.load %arg6[%c0_44, %c0_45, %c0_46] : memref<1x8x256xf32, #tpu.memory_space<vmem>>, vector<1x8x256xf32>
    %52 = vector.shape_cast %51 : vector<1x8x256xf32> to vector<8x256xf32>
    %53 = vector.shape_cast %50 : vector<8x256xf32> to vector<1x8x256xf32>
    tpu.vector_store %arg6[%c0_44, %c0_45, %c0_46], %53 {strides = array<i32>} : memref<1x8x256xf32, #tpu.memory_space<vmem>>, vector<1x8x256xf32>,
    %cst_47 = arith.constant dense<0.000000e+00> : vector<8xf32>
    %54 = vector.multi_reduction <add>, %50, %cst_47 [1] : vector<8x256xf32> to vector<8xf32>
    %55 = vector.shape_cast %54 : vector<8xf32> to vector<8x1xf32>
    %c0_48 = arith.constant 0 : index
    %c0_49 = arith.constant 0 : index
    %c0_50 = arith.constant 0 : index
    %56 = vector.load %arg7[%c0_48, %c0_49, %c0_50] : memref<1x8x1xf32, #tpu.memory_space<vmem>>, vector<1x8x1xf32>
    %57 = vector.shape_cast %56 : vector<1x8x1xf32> to vector<8x1xf32>
    %58 = vector.shape_cast %55 : vector<8x1xf32> to vector<1x8x1xf32>
    tpu.vector_store %arg7[%c0_48, %c0_49, %c0_50], %58 {strides = array<i32>} : memref<1x8x1xf32, #tpu.memory_space<vmem>>, vector<1x8x1xf32>,
    %59 = arith.mulf %50, %50 : vector<8x256xf32>
    %cst_51 = arith.constant dense<0.000000e+00> : vector<8xf32>
    %60 = vector.multi_reduction <add>, %59, %cst_51 [1] : vector<8x256xf32> to vector<8xf32>
    %61 = vector.shape_cast %60 : vector<8xf32> to vector<8x1xf32>
    %c0_52 = arith.constant 0 : index
    %c0_53 = arith.constant 0 : index
    %c0_54 = arith.constant 0 : index
    %62 = vector.load %arg8[%c0_52, %c0_53, %c0_54] : memref<1x8x1xf32, #tpu.memory_space<vmem>>, vector<1x8x1xf32>
    %63 = vector.shape_cast %62 : vector<1x8x1xf32> to vector<8x1xf32>
    %64 = vector.shape_cast %61 : vector<8x1xf32> to vector<1x8x1xf32>
    tpu.vector_store %arg8[%c0_52, %c0_53, %c0_54], %64 {strides = array<i32>} : memref<1x8x1xf32, #tpu.memory_space<vmem>>, vector<1x8x1xf32>,
    return
  }
  func.func @transform_0(%arg0: i32) -> (i32, i32, i32) {
    %c0_i32 = arith.constant 0 : i32
    %c0_i32_0 = arith.constant 0 : i32
    %c0_i32_1 = arith.constant 0 : i32
    return %arg0, %c0_i32, %c0_i32_0 : i32, i32, i32
  }
  func.func @transform_1(%arg0: i32) -> (i32, i32) {
    %c0_i32 = arith.constant 0 : i32
    %c0_i32_0 = arith.constant 0 : i32
    %c0_i32_1 = arith.constant 0 : i32
    return %c0_i32, %c0_i32_0 : i32, i32
  }
  func.func @transform_2(%arg0: i32) -> (i32, i32) {
    %c0_i32 = arith.constant 0 : i32
    %c0_i32_0 = arith.constant 0 : i32
    %c0_i32_1 = arith.constant 0 : i32
    return %c0_i32, %c0_i32_0 : i32, i32
  }
  func.func @transform_3(%arg0: i32) -> (i32, i32) {
    %c0_i32 = arith.constant 0 : i32
    %c0_i32_0 = arith.constant 0 : i32
    %c0_i32_1 = arith.constant 0 : i32
    return %c0_i32, %c0_i32_0 : i32, i32
  }
  func.func @transform_4(%arg0: i32) -> (i32, i32) {
    %c0_i32 = arith.constant 0 : i32
    %c0_i32_0 = arith.constant 0 : i32
    %c0_i32_1 = arith.constant 0 : i32
    return %c0_i32, %c0_i32_0 : i32, i32
  }
  func.func @transform_5(%arg0: i32) -> (i32, i32, i32) {
    %c0_i32 = arith.constant 0 : i32
    %c0_i32_0 = arith.constant 0 : i32
    %c0_i32_1 = arith.constant 0 : i32
    return %arg0, %c0_i32, %c0_i32_0 : i32, i32, i32
  }
  func.func @transform_6(%arg0: i32) -> (i32, i32, i32) {
    %c0_i32 = arith.constant 0 : i32
    %c0_i32_0 = arith.constant 0 : i32
    %c0_i32_1 = arith.constant 0 : i32
    return %arg0, %c0_i32, %c0_i32_0 : i32, i32, i32
  }
  func.func @transform_7(%arg0: i32) -> (i32, i32, i32) {
    %c0_i32 = arith.constant 0 : i32
    %c0_i32_0 = arith.constant 0 : i32
    %c0_i32_1 = arith.constant 0 : i32
    return %arg0, %c0_i32, %c0_i32_0 : i32, i32, i32
  }
}

</mosaic_0001>

<bundles_post_ra>
// kernel: tpu_custom_call.1
= control target key start
LH: loop header
LB: loop body
LE: loop exit
PB: predicated region body
PF: predicated region fallthrough
CT: control target
= control target key end

     0   :  { %s1381_s0 = inlined_call_operand.hbm [shape: f32[2,4,290], index: 0, kind: input, shape index: {}]   ;;  %s1382_s1 = inlined_call_operand.vmem [shape: f32[8,36], index: 1, kind: input, shape index: {}]   ;;  %s1383_s2 = inlined_call_operand.hbm [shape: f32[9,256], index: 2, kind: input, shape index: {}]   ;;  %s1384_s3 = inlined_call_operand.vmem [shape: f32[4,1], index: 3, kind: input, shape index: {}]   ;;  %s1385_s4 = inlined_call_operand.vmem [shape: f32[4,1], index: 4, kind: input, shape index: {}]   ;;  %s1386_s5 = inlined_call_operand.hbm [shape: f32[2,8,256], index: 5, kind: output, shape index: {0}]   ;;  %s1387_s6 = inlined_call_operand.vmem [shape: f32[2,8,1], index: 6, kind: output, shape index: {1}]   ;;  %s1388_s7 = inlined_call_operand.vmem [shape: f32[2,8,1], index: 7, kind: output, shape index: {2}]  }
   0x1   :  { %1389 = sst [smem:[#allocation14_spill]] %s1383_s2 }
   0x2   :  { %13 = vsyncpa [#allocation5], 0 }
   0x3   :  { %15 = vsyncpa [#allocation5 + $0x1], 0 }
   0x4   :  { %16 = vsyncpa [#allocation8], 0 }
   0x5   :  { %17 = vsyncpa [#allocation6], 0 }
   0x6   :  { %19 = vsyncpa [#allocation6 + $0x1], 0  ;;  %s1195_s24 = smov 0   ;;  %s1197_s3 = smov 0  }
   0x7   :  { %s1199_s25 = smov 0   ;;  %s1201_s4 = smov 0  }
   0x8 LB: > { %s1390_s2 = sld [smem:[#allocation14_spill]]  ;;  %s1219_s29 = sadd.s32 4294967295, %s1134_s4   ;;  %s1134_s4 = sphi %s1201_s4, %s1402_s4   ;;  %s1130_s25 = sphi %s1199_s25, %s1401_s25   ;;  %s1126_s3 = sphi %s1197_s3, %s1400_s3   ;;  %s1122_s24 = sphi %s1195_s24, %s1399_s24  }
   0x9   : > { %p907_p0 = scmp.ge.s32.totalorder %s1134_s4, 1  ;;  %p46_p1 = scmp.eq.s32.totalorder %s1219_s29, 0 }
   0xa   : > { %p218_p2 = scmp.lt.s32.totalorder %s1134_s4, 3  ;;  %s1136_s8 = smov [#allocation7]  }
   0xb   : > { %s234_s9 = sshll.u32 %s1136_s8, 4  ;;  %s1137_s10 = smov 256   ;;  %s235_s9 = int_to_ptr.vmem [resolvable:$true] %s234_s9 }
   0xc   : > { %p1224_p3 = pnand %p907_p0, %p218_p2  ;;  %s1138_s11 = smov 16  }
   0xd   : > { %s906_s12 = sadd.s32 4294967294, %s1134_s4   ;;  %s1235_s13 = sadd.s32 1, %s1134_s4  }
   0xe   : > { %s232_s28 = sshll.u32 %s1390_s2, 4  ;;  %p937_p4 = pneg %p1224_p3  ;;  %s233_s28 = int_to_ptr.hbm [resolvable:$true] %s232_s28 }
   0xf   : > { %s32_s14 = sadd.s32 1, %s1130_s25  ;;  %s29_s15 = ssub.s32 %s1134_s4, %s1235_s13 }
  0x10   : > { %p938_p6 = pnand %p937_p4, %p46_p1  ;;  %p39_p7 = scmp.ne.s32.totalorder %s1130_s25, %s1126_s3 }
  0x11   : > { %p30_p8 = scmp.eq.s32.totalorder %s29_s15, 0  ;;  %p40_p9 = scmp.eq.s32.totalorder %s1134_s4, 0 }
  0x12   : > { %940 = dma.hbm_to_vmem [thread:$0]  (!%p938_p6), %s233_s28, 512, %s235_s9, [#allocation8], %s1137_s10, %s1137_s10, %s1138_s11  }
  0x13   : > { %p45_p10 = scmp.ne.s32.totalorder %s1126_s3, %s1122_s24  ;;  %p153_p11 = scmp.eq.s32.totalorder %s1219_s29, 1 }
  0x14   : > { %s1247_s16 = scalar_select %p30_p8, %s1130_s25, %s32_s14  }
  0x15   : > { %p41_p12 = por %p40_p9, %p39_p7  ;;  %p1251_p13 = por %p46_p1, %p45_p10 }
  0x16   : > { %1392 = sst [smem:[#allocation13_spill]] %s1247_s16  ;;  %p1255_p0 = por %p153_p11, %p39_p7 }
  0x17   : > { %p159_p2 = scmp.eq.s32.totalorder %s906_s12, 1  ;;  %p950_p4 = scmp.lt.s32.totalorder %s1134_s4, 2 }
  0x18   : > { %s254_s19 = sand.u32 1, %s1130_s25   ;;  %s927_s23 = smul.u32 12, %s1134_s4 }
  0x19   : > { %p1261_p6 = por %p159_p2, %p45_p10  ;;  %s926_s21 = smul.u32 12, %s254_s19 }
  0x1a   : > { %p1265_p8 = pnand %p950_p4, %p41_p12  ;;  %s263_s28 = scalar_lea.hbm %s1381_s0, %s927_s23 }
  0x1b   : > { %s258_s8 = scalar_lea.vmem [#allocation4], %s926_s21  ;;  %s265_s10 = sshll.u32 %s263_s28, 4  ;;  %s266_s10 = int_to_ptr.hbm [resolvable:$true] %s265_s10 }
  0x1c   : > { %s267_s9 = sshll.u32 %s258_s8, 4  ;;  %s255_s11 = scalar_lea.sflag [#allocation5], %s254_s19  ;;  %s268_s9 = int_to_ptr.vmem [resolvable:$true] %s267_s9 }
  0x1d   : > { %s1034_s12 = sshra.s32 %s266_s10, 4  ;;  %p1038_p9 = pneg %p1265_p8  ;;  %s1035_s12 = int_to_ptr.hbm [resolvable:$true] %s1034_s12 }
  0x1e   : > { %s1036_s14 = scalar_lea.hbm %s1035_s12, 12  ;;  %s1041_s16 = scalar_lea.hbm %s1381_s0, 24 }
  0x1f   : > { %p1037_p7 = scmp.ne.s32.totalorder %s1035_s12, %s1036_s14  ;;  %p1042_p12 = scmp.lt.s32.totalorder %s1035_s12, %s1381_s0 }
  0x20   : > { %p1043_p2 = scmp.lt.s32.totalorder %s1041_s16, %s1036_s14 }
  0x21   : > { %p1039_p10 = pnand %p1038_p9, %p1037_p7 }
  0x22   : > { %p1044_p4 = por %p1043_p2, %p1042_p12 }
  0x23   : > { %p1040_p11 = pneg %p1039_p10 }
  0x25   : > { %p1045_p5 = pnand %p1044_p4, %p1040_p11 }
  0x27   : > { %1048 = shalt.err (!%p1045_p5)
}
  0x28   : > { %944 = dma.hbm_to_vmem [thread:$0]  (!%p1265_p8), %s266_s10, 192, %s268_s9, %s255_s11  }
  0x29   : > { %276 = sbr.rel (%p1224_p3) target bundleno = 620 (0x26c), region = 40  ;;  %s1286_s19 = sand.u32 (!%p1224_p3), 1, %s1126_s3  }
  0x2a   : > { %s928_s2 = smul.u32 (!%p1224_p3), 12, %s1286_s19  ;;  %s279_s21 = scalar_lea.sflag (!%p1224_p3), [#allocation5], %s1286_s19 }
  0x2c   : > { %s1290_s27 = scalar_lea.vmem (!%p1224_p3), [#allocation4], %s928_s2 }
  0x2e   : > { %1109 = dma.done.wait (%p1251_p13), %s279_s21, 192  }
  0x2f   : > { %1111 = vsyncadd (%p1251_p13), %s279_s21, 4294967104 }
  0x30   : > { %1113 = dma.done.wait (%p46_p1), [#allocation8], 512  }
  0x31   : > { %1115 = vsyncadd (%p46_p1), [#allocation8], 4294966784  ;;  %v361_v0 = vld [vmem:[#allocation7 + $0x1] ss:$8 sm:$0x3]  ;;  %vm346_vm0 = vcmask 1043456  }
  0x32   : > { %v363_v1 = vperm.slane %v361_v0, 0  ;;  %v364_v2 = vperm.slane %v361_v0, 1  ;;  %v401_v3 = vld [vmem:[#allocation7 + $0x2] ss:$8 sm:$0x3]  ;;  %s1139_s30 = smov 1  }
  0x33   : > { %v440_v4 = vld [vmem:[#allocation7 + $0x3] ss:$8 sm:$0x3]  ;;  %v404_v6 = vperm.slane %v401_v3, 1  ;;  %v403_v13 = vperm.slane %v401_v3, 0  ;;  %s1140_s16 = smov 16  }
  0x34   : > { %v365_v5 = vrot.slane %v364_v2, 4  ;;  %v442_v7 = vperm.slane %v440_v4, 0  ;;  %v443_v8 = vperm.slane %v440_v4, 1  ;;  %v480_v9 = vld [vmem:[#allocation7 + $0x4] ss:$8 sm:$0x3] }
  0x35   : > { %v483_v12 = vperm.slane %v480_v9, 1  ;;  %v405_v14 = vrot.slane %v404_v6, 4  ;;  %v519_v15 = vld [vmem:[#allocation7 + $0x5] ss:$8 sm:$0x3]  ;;  %v482_v21 = vperm.slane %v480_v9, 0 }
  0x36   : > { %v366_v10 = vsel %vm346_vm0, %v363_v1, %v365_v5  ;;  %v444_v11 = vrot.slane %v443_v8, 4  ;;  %v598_v17 = vld [vmem:[#allocation7 + $0x7] ss:$8 sm:$0x3]  ;;  %v521_v19 = vperm.slane %v519_v15, 0  ;;  %v522_v20 = vperm.slane %v519_v15, 1 }
  0x37   : > { %367 = vrot.lane.b32.xlu0 %v366_v10, %s1139_s30  ;;  %v559_v18 = vld [vmem:[#allocation7 + $0x6] ss:$8 sm:$0x3]  ;;  %v484_v22 = vrot.slane %v483_v12, 4  ;;  %v406_v23 = vsel %vm346_vm0, %v403_v13, %v405_v14  ;;  %v601_v24 = vperm.slane %v598_v17, 1  ;;  %s1141_s17 = smov 2  }
  0x38   : > { %v445_v16 = vsel %vm346_vm0, %v442_v7, %v444_v11  ;;  %v523_v25 = vrot.slane %v522_v20, 4  ;;  %v638_v26 = vld [vmem:[#allocation7 + $0x10] ss:$8 sm:$0x3]  ;;  %v562_v27 = vperm.slane %v559_v18, 1  ;;  %s1142_s22 = smov 18  }
  0x39   : > { %446 = vrot.lane.b32.xlu1 %v445_v16, %s1140_s16  ;;  %v485_v29 = vsel %vm346_vm0, %v482_v21, %v484_v22  ;;  %v641_v30 = vperm.slane %v638_v26, 1  ;;  %v600_v31 = vperm.slane %v598_v17, 0  ;;  %v602_v32 = vrot.slane %v601_v24, 4  ;;  %s1143_s28 = smov 17   ;;  %s1144_s8 = smov 33   ;;  %v1311_v46 = vld [vmem:[%s1290_s27] sm:$0xff] }
  0x3a   : > { %v524_v28 = vsel %vm346_vm0, %v521_v19, %v523_v25  ;;  %v561_v33 = vperm.slane %v559_v18, 0  ;;  %v563_v34 = vrot.slane %v562_v27, 4  ;;  %v640_v35 = vperm.slane %v638_v26, 0  ;;  %s1145_s9 = smov 32   ;;  %s1146_s10 = smov 34  }
  0x3b   : > { %525 = vrot.lane.b32.xlu2 %v524_v28, %s1142_s22  ;;  %v642_v36 = vrot.slane %v641_v30, 4  ;;  %v603_v37 = vsel %vm346_vm0, %v600_v31, %v602_v32  ;;  %v341_v40 = vld [vmem:[#allocation7] ss:$8 sm:$0x3]  ;;  %vm338_vm1 = vcmask 273408   ;;  %vm370_vm2 = vcmask 7168  }
  0x3c   : > { %v564_v38 = vsel %vm346_vm0, %v561_v33, %v563_v34  ;;  %v344_v41 = vperm.slane %v341_v40, 1  ;;  %v343_v42 = vperm.slane %v341_v40, 0  ;;  %v336_v45 = vld [vmem:[%s1290_s27 + $0x8] sm:$0xf]  ;;  %vm410_vm3 = vcmask 15360   ;;  %s1147_s11 = smov 126  }
  0x3d   : > { %v643_v39 = vsel %vm346_vm0, %v640_v35, %v642_v36  ;;  %339 = vst.msk [vmem:[#allocation2 + $0x8] sm:$0xf] %vm338_vm1, %v336_v45  ;;  %vm449_vm4 = vcmask 130048   ;;  %vm489_vm5 = vcmask 138240   ;;  %vm528_vm6 = vcmask 146432   ;;  %s1148_s12 = smov 112  }
  0x3e   : > { %v345_v43 = vrot.slane %v344_v41, 4  ;;  %vm568_vm7 = vcmask 261120   ;;  %s1149_s14 = smov 111   ;;  %vm607_vm8 = vcmask 269312   ;;  %s1150_s15 = smov 110   ;;  %vm647_vm9 = vcmask 277504  }
  0x3f   : > { %407 = vrot.lane.b32.xlu0 %v406_v23, %s1141_s17  ;;  %s1151_s26 = smov 96   ;;  %s1152_s23 = smov 95   ;;  %vm430_vm10 = vcmask 1031168   ;;  %vm470_vm11 = vcmask 916480   ;;  %vm509_vm12 = vcmask 908288   ;;  %vm549_vm13 = vcmask 900096  }
  0x40   : > { %v347_v44 = vsel %vm346_vm0, %v343_v42, %v345_v43  ;;  %s1153_s2 = smov 94   ;;  %s1154_s21 = smov 127   ;;  %vm588_vm14 = vcmask 785408   ;;  %vm628_vm15 = vcmask 777216   ;;  %vm667_vm1 = vcmask 769024  }
  0x41   : > { %486 = vrot.lane.b32.xlu1 %v485_v29, %s1143_s28  ;;  %v349_v47 = vmul.f32 %v347_v44, %v1311_v46  ;;  %s925_s16 = sshll.u32 %s1219_s29, 4  ;;  %s913_s17 = sshll.u32 %s1286_s19, 4 }
  0x43   : > { %565 = vrot.lane.b32.xlu2 %v564_v38, %s1145_s9  ;;  %351 = vst [vmem:[#allocation1] ss:$2 sm:$0xff] %v349_v47  ;;  %s314_s9 = scalar_lea.vmem [#allocation9], %s913_s17 }
  0x44   : > { %v359_v51 = vld [vmem:[#allocation2 + $0x8] sm:$0xf] }
  0x45   : > { %v399_v58 = vld [vmem:[#allocation2 + $0x8] sm:$0xf] }
  0x46   : > { %v438_v3 = vld [vmem:[#allocation2 + $0x8] sm:$0xf] }
  0x47   : > { %604 = vrot.lane.b32.xlu0 %v603_v37, %s1144_s8  ;;  %v478_v13 = vld [vmem:[#allocation2 + $0x8] sm:$0xf]  ;;  %s767_s8 = scalar_lea.hbm %s1386_s5, %s925_s16 }
  0x48   : > { %v517_v21 = vld [vmem:[#allocation2 + $0x8] sm:$0xf] }
  0x49   : > { %644 = vrot.lane.b32.xlu1 %v643_v39, %s1146_s10  ;;  %v557_v30 = vld [vmem:[#allocation2 + $0x8] sm:$0xf]  ;;  %s769_s10 = sshll.u32 %s314_s9, 4  ;;  %s770_s10 = int_to_ptr.vmem [resolvable:$true] %s769_s10 }
  0x4a   : > { %v352_v48 = vld.sshfl [vmem:[#allocation1] sm:$0xff pattern:$0x75316420]  ;;  %v353_v49 = vld.sshfl [vmem:[#allocation1 + $0x8] sm:$0xff pattern:$0x75316420] }
  0x4b   : > { %356 = vst [vmem:[#allocation3 + $0x30] sm:$0xf] %v352_v48  ;;  %v596_v39 = vld [vmem:[#allocation2 + $0x8] sm:$0xf] }
  0x4c   : > { %357 = vst [vmem:[#allocation3] sm:$0xf] %v353_v49  ;;  %v636_v49 = vld [vmem:[#allocation2 + $0x8] sm:$0xf] }
  0x95   : > { %v526_v12 = vpop.permute.xlu2 %525 }
  0x96   : > { %v527_v17 = vrot.slane %v526_v12, 4 }
  0x98   : > { %v529_v22 = vsel %vm528_vm6, %v527_v17, %v526_v12  ;;  %v533_v24 = vmul.f32 %v527_v17, %v517_v21 }
  0x99   : > { %v532_v25 = vmul.f32 %v529_v22, %v1311_v46 }
  0x9d   : > { %v566_v23 = vpop.permute.xlu2 %565 }
  0x9e   : > { %v567_v26 = vrot.slane %v566_v23, 4 }
  0xa0   : > { %v569_v31 = vsel %vm568_vm7, %v567_v26, %v566_v23  ;;  %v573_v33 = vmul.f32 %v567_v26, %v557_v30 }
  0xa1   : > { %v572_v34 = vmul.f32 %v569_v31, %v1311_v46 }
  0xa9   : > { %v368_v50 = vpop.permute.xlu0 %367 }
  0xaa   : > { %v369_v52 = vrot.slane %v368_v50, 4 }
  0xab   : > { %v447_v56 = vpop.permute.xlu1 %446 }
  0xac   : > { %v371_v53 = vsel %vm370_vm2, %v369_v52, %v368_v50  ;;  %v375_v54 = vmul.f32 %v369_v52, %v359_v51  ;;  %v448_v0 = vrot.slane %v447_v56, 4 }
  0xad   : > { %v374_v55 = vmul.f32 %v371_v53, %v1311_v46 }
  0xae   : > { %381 = vst [vmem:[#allocation1 + $0x11] ss:$2 sm:$0xff] %v375_v54  ;;  %v450_v4 = vsel %vm449_vm4, %v448_v0, %v447_v56  ;;  %v454_v6 = vmul.f32 %v448_v0, %v438_v3  ;;  %vm685_vm4 = vcmask 293888  }
  0xaf   : > { %379 = vst [vmem:[#allocation1 + $0x1] ss:$2 sm:$0xff] %v374_v55  ;;  %v453_v7 = vmul.f32 %v450_v4, %v1311_v46 }
  0xb1   : > { %v408_v57 = vpop.permute.xlu0 %407 }
  0xb2   : > { %v409_v59 = vrot.slane %v408_v57, 4 }
  0xb3   : > { %v487_v5 = vpop.permute.xlu1 %486 }
  0xb4   : > { %v411_v60 = vsel %vm410_vm3, %v409_v59, %v408_v57  ;;  %v415_v61 = vmul.f32 %v409_v59, %v399_v58  ;;  %v488_v8 = vrot.slane %v487_v5, 4  ;;  %vm391_vm3 = vcmask 1039360  }
  0xb5   : > { %v1316_v62 = vld.sshfl [vmem:[#allocation1 + $0x10] sm:$0xff pattern:$0x75316420]  ;;  %v414_v63 = vmul.f32 %v411_v60, %v1311_v46 }
  0xb6   : > { %v1319_v1 = vld.sshfl [vmem:[#allocation1] sm:$0xff pattern:$0x75316420]  ;;  %v1321_v2 = vld.sshfl [vmem:[#allocation1 + $0x8] sm:$0xff pattern:$0x75316420]  ;;  %v490_v14 = vsel %vm489_vm5, %v488_v8, %v487_v5  ;;  %v494_v15 = vmul.f32 %v488_v8, %v478_v13 }
  0xb7   : > { %418 = vst [vmem:[#allocation1] ss:$2 sm:$0xff] %v414_v63  ;;  %v493_v16 = vmul.f32 %v490_v14, %v1311_v46 }
  0xb8   : > { %420 = vst [vmem:[#allocation1 + $0x10] ss:$2 sm:$0xff] %v415_v61 }
  0xb9   : > { %v605_v32 = vpop.permute.xlu0 %604 }
  0xba   : > { %v606_v35 = vrot.slane %v605_v32, 4 }
  0xbb   : > { %v645_v41 = vpop.permute.xlu1 %644 }
  0xbc   : > { %v608_v40 = vsel %vm607_vm8, %v606_v35, %v605_v32  ;;  %v612_v42 = vmul.f32 %v606_v35, %v596_v39  ;;  %v646_v44 = vrot.slane %v645_v41, 4 }
  0xbd   : > { %v611_v43 = vmul.f32 %v608_v40, %v1311_v46 }
  0xbe   : > { %v422_v9 = vld.sshfl [vmem:[#allocation1 + $0x8] sm:$0xff pattern:$0x75316420]  ;;  %v421_v10 = vld.sshfl [vmem:[#allocation1] sm:$0xff pattern:$0x75316420]  ;;  %v648_v50 = vsel %vm647_vm9, %v646_v44, %v645_v41  ;;  %v652_v51 = vmul.f32 %v646_v44, %v636_v49 }
  0xbf   : > { %v423_v11 = vld.sshfl [vmem:[#allocation1 + $0x10] sm:$0xff pattern:$0x75316420]  ;;  %426 = vrot.lane.b32.xlu0 %v422_v9, %s1147_s11  ;;  %424 = vrot.lane.b32.xlu2 %v421_v10, %s1147_s11  ;;  %458 = vst [vmem:[#allocation1 + $0x1] ss:$2 sm:$0xff] %v453_v7  ;;  %v651_v52 = vmul.f32 %v648_v50, %v1311_v46 }
  0xc0   : > { %428 = vrot.lane.b32.xlu1 %v423_v11, %s1147_s11  ;;  %460 = vst [vmem:[#allocation1 + $0x11] ss:$2 sm:$0xff] %v454_v6  ;;  %s771_s11 = sshll.u32 %s767_s8, 4  ;;  %s772_s11 = int_to_ptr.hbm [resolvable:$true] %s771_s11 }
  0xc6   : > { %v462_v18 = vld.sshfl [vmem:[#allocation1 + $0x8] sm:$0xff pattern:$0x75316420]  ;;  %v461_v19 = vld.sshfl [vmem:[#allocation1] sm:$0xff pattern:$0x75316420] }
  0xc7   : > { %v463_v20 = vld.sshfl [vmem:[#allocation1 + $0x10] sm:$0xff pattern:$0x75316420]  ;;  %466 = vrot.lane.b32.xlu0 %v462_v18, %s1148_s12  ;;  %464 = vrot.lane.b32.xlu2 %v461_v19, %s1148_s12  ;;  %497 = vst [vmem:[#allocation1] ss:$2 sm:$0xff] %v493_v16 }
  0xc8   : > { %468 = vrot.lane.b32.xlu1 %v463_v20, %s1148_s12  ;;  %499 = vst [vmem:[#allocation1 + $0x10] ss:$2 sm:$0xff] %v494_v15  ;;  %s748_s12 = scalar_lea.sflag [#allocation6], %s1286_s19 }
  0xce   : > { %v501_v27 = vld.sshfl [vmem:[#allocation1 + $0x8] sm:$0xff pattern:$0x75316420]  ;;  %v500_v28 = vld.sshfl [vmem:[#allocation1] sm:$0xff pattern:$0x75316420] }
  0xcf   : > { %v502_v29 = vld.sshfl [vmem:[#allocation1 + $0x10] sm:$0xff pattern:$0x75316420]  ;;  %505 = vrot.lane.b32.xlu0 %v501_v27, %s1149_s14  ;;  %503 = vrot.lane.b32.xlu2 %v500_v28, %s1149_s14  ;;  %537 = vst [vmem:[#allocation1 + $0x1] ss:$2 sm:$0xff] %v532_v25 }
  0xd0   : > { %507 = vrot.lane.b32.xlu1 %v502_v29, %s1149_s14  ;;  %539 = vst [vmem:[#allocation1 + $0x11] ss:$2 sm:$0xff] %v533_v24  ;;  %s1078_s14 = sshra.s32 %s772_s11, 4  ;;  %s1079_s14 = int_to_ptr.hbm [resolvable:$true] %s1078_s14 }
  0xd1   : > { %p1085_p13 = scmp.lt.s32.totalorder %s1079_s14, %s1386_s5 }
  0xd6   : > { %v541_v36 = vld.sshfl [vmem:[#allocation1 + $0x8] sm:$0xff pattern:$0x75316420]  ;;  %v540_v37 = vld.sshfl [vmem:[#allocation1] sm:$0xff pattern:$0x75316420] }
  0xd7   : > { %v542_v38 = vld.sshfl [vmem:[#allocation1 + $0x10] sm:$0xff pattern:$0x75316420]  ;;  %545 = vrot.lane.b32.xlu0 %v541_v36, %s1150_s15  ;;  %543 = vrot.lane.b32.xlu2 %v540_v37, %s1150_s15  ;;  %576 = vst [vmem:[#allocation1] ss:$2 sm:$0xff] %v572_v34 }
  0xd8   : > { %547 = vrot.lane.b32.xlu1 %v542_v38, %s1150_s15  ;;  %578 = vst [vmem:[#allocation1 + $0x10] ss:$2 sm:$0xff] %v573_v33  ;;  %s1080_s15 = scalar_lea.hbm %s1079_s14, 16 }
  0xd9   : > { %p1081_p1 = scmp.ne.s32.totalorder %s1079_s14, %s1080_s15 }
  0xdb   : > { %p1082_p3 = pnand %p1081_p1, %p1255_p0 }
  0xdd   : > { %p1083_p5 = pneg %p1082_p3 }
  0xde   : > { %v580_v45 = vld.sshfl [vmem:[#allocation1 + $0x8] sm:$0xff pattern:$0x75316420]  ;;  %v579_v47 = vld.sshfl [vmem:[#allocation1] sm:$0xff pattern:$0x75316420] }
  0xdf   : > { %v581_v48 = vld.sshfl [vmem:[#allocation1 + $0x10] sm:$0xff pattern:$0x75316420]  ;;  %584 = vrot.lane.b32.xlu0 %v580_v45, %s1151_s26  ;;  %582 = vrot.lane.b32.xlu2 %v579_v47, %s1151_s26  ;;  %616 = vst [vmem:[#allocation1 + $0x1] ss:$2 sm:$0xff] %v611_v43 }
  0xe0   : > { %586 = vrot.lane.b32.xlu1 %v581_v48, %s1151_s26  ;;  %618 = vst [vmem:[#allocation1 + $0x11] ss:$2 sm:$0xff] %v612_v42  ;;  %v674_v42 = vld [vmem:[%s1382_s1] sm:$0xff] }
  0xe6   : > { %v620_v53 = vld.sshfl [vmem:[#allocation1 + $0x8] sm:$0xff pattern:$0x75316420]  ;;  %v619_v54 = vld.sshfl [vmem:[#allocation1] sm:$0xff pattern:$0x75316420] }
  0xe7   : > { %v621_v55 = vld.sshfl [vmem:[#allocation1 + $0x10] sm:$0xff pattern:$0x75316420]  ;;  %624 = vrot.lane.b32.xlu0 %v620_v53, %s1152_s23  ;;  %622 = vrot.lane.b32.xlu2 %v619_v54, %s1152_s23  ;;  %655 = vst [vmem:[#allocation1] ss:$2 sm:$0xff] %v651_v52 }
  0xe8   : > { %626 = vrot.lane.b32.xlu1 %v621_v55, %s1152_s23  ;;  %657 = vst [vmem:[#allocation1 + $0x10] ss:$2 sm:$0xff] %v652_v51 }
  0xee   : > { %v659_v56 = vld.sshfl [vmem:[#allocation1 + $0x8] sm:$0xff pattern:$0x75316420]  ;;  %v658_v57 = vld.sshfl [vmem:[#allocation1] sm:$0xff pattern:$0x75316420] }
  0xef   : > { %v660_v58 = vld.sshfl [vmem:[#allocation1 + $0x10] sm:$0xff pattern:$0x75316420]  ;;  %663 = vrot.lane.b32.xlu0 %v659_v56, %s1153_s2  ;;  %661 = vrot.lane.b32.xlu2 %v658_v57, %s1153_s2 }
  0xf0   : > { %665 = vrot.lane.b32.xlu1 %v660_v58, %s1153_s2  ;;  %s1084_s2 = scalar_lea.hbm %s1386_s5, 32 }
  0xf1   : > { %p1086_p8 = scmp.lt.s32.totalorder %s1084_s2, %s1080_s15 }
  0xf3   : > { %p1087_p7 = por %p1086_p8, %p1085_p13 }
  0xf5   : > { %p1088_p9 = pnand %p1087_p7, %p1083_p5 }
  0xf7   : > { %387 = vrot.lane.b32.xlu0 %v1321_v2, %s1154_s21  ;;  %385 = vrot.lane.b32.xlu2 %v1319_v1, %s1154_s21 }
  0xf8   : > { %389 = vrot.lane.b32.xlu1 %v1316_v62, %s1154_s21 }
 0x119   : > { %v425_v46 = vpop.permute.xlu2 %424 }
 0x121   : > { %v465_v59 = vpop.permute.xlu2 %464 }
 0x129   : > { %v504_v3 = vpop.permute.xlu2 %503 }
 0x131   : > { %v427_v60 = vpop.permute.xlu0 %426  ;;  %v544_v1 = vpop.permute.xlu2 %543 }
 0x132   : > { %v429_v61 = vpop.permute.xlu1 %428  ;;  %v431_v63 = vsel %vm430_vm10, %v425_v46, %v427_v60 }
 0x133   : > { %v432_v0 = vsel %vm430_vm10, %v427_v60, %v429_v61  ;;  %435 = vst [vmem:[#allocation3 + $0x18] sm:$0xf] %v431_v63 }
 0x134   : > { %436 = vst [vmem:[#allocation3 + $0x10] sm:$0xf] %v432_v0 }
 0x139   : > { %v467_v4 = vpop.permute.xlu0 %466  ;;  %v583_v13 = vpop.permute.xlu2 %582 }
 0x13a   : > { %v469_v5 = vpop.permute.xlu1 %468  ;;  %v471_v6 = vsel %vm470_vm11, %v465_v59, %v467_v4 }
 0x13b   : > { %v472_v7 = vsel %vm470_vm11, %v467_v4, %v469_v5  ;;  %475 = vst [vmem:[#allocation3 + $0x18] sm:$0xf0] %v471_v6 }
 0x13c   : > { %476 = vst [vmem:[#allocation3 + $0x10] sm:$0xf0] %v472_v7 }
 0x141   : > { %v506_v62 = vpop.permute.xlu0 %505  ;;  %v623_v19 = vpop.permute.xlu2 %622 }
 0x142   : > { %v508_v2 = vpop.permute.xlu1 %507  ;;  %v510_v8 = vsel %vm509_vm12, %v504_v3, %v506_v62  ;;  %v677_v40 = vld [vmem:[#allocation3 + $0x18] sm:$0xff] }
 0x143   : > { %v511_v9 = vsel %vm509_vm12, %v506_v62, %v508_v2  ;;  %514 = vst [vmem:[#allocation3 + $0x48] sm:$0xf] %v510_v8  ;;  %v678_v41 = vld [vmem:[#allocation3 + $0x10] sm:$0xff] }
 0x144   : > { %515 = vst [vmem:[#allocation3 + $0x28] sm:$0xf] %v511_v9 }
 0x149   : > { %v546_v10 = vpop.permute.xlu0 %545  ;;  %v662_v24 = vpop.permute.xlu2 %661 }
 0x14a   : > { %v548_v11 = vpop.permute.xlu1 %547  ;;  %v550_v12 = vsel %vm549_vm13, %v544_v1, %v546_v10 }
 0x14b   : > { %v551_v14 = vsel %vm549_vm13, %v546_v10, %v548_v11  ;;  %554 = vst [vmem:[#allocation3 + $0x48] sm:$0xf0] %v550_v12 }
 0x14c   : > { %555 = vst [vmem:[#allocation3 + $0x28] sm:$0xf0] %v551_v14 }
 0x151   : > { %v585_v15 = vpop.permute.xlu0 %584  ;;  %v386_v29 = vpop.permute.xlu2 %385 }
 0x152   : > { %v587_v16 = vpop.permute.xlu1 %586  ;;  %v589_v17 = vsel %vm588_vm14, %v583_v13, %v585_v15  ;;  %v679_v38 = vld [vmem:[#allocation3 + $0x48] sm:$0xff] }
 0x153   : > { %v590_v18 = vsel %vm588_vm14, %v585_v15, %v587_v16  ;;  %593 = vst [vmem:[#allocation3 + $0x8] sm:$0xf] %v589_v17  ;;  %v680_v39 = vld [vmem:[#allocation3 + $0x28] sm:$0xff] }
 0x154   : > { %594 = vst [vmem:[#allocation3 + $0x20] sm:$0xf] %v590_v18 }
 0x159   : > { %v625_v20 = vpop.permute.xlu0 %624 }
 0x15a   : > { %v627_v21 = vpop.permute.xlu1 %626  ;;  %v629_v22 = vsel %vm628_vm15, %v623_v19, %v625_v20 }
 0x15b   : > { %v630_v23 = vsel %vm628_vm15, %v625_v20, %v627_v21  ;;  %633 = vst [vmem:[#allocation3 + $0x8] sm:$0xf0] %v629_v22 }
 0x15c   : > { %634 = vst [vmem:[#allocation3 + $0x20] sm:$0xf0] %v630_v23 }
 0x161   : > { %v664_v25 = vpop.permute.xlu0 %663 }
 0x162   : > { %v666_v26 = vpop.permute.xlu1 %665  ;;  %v668_v27 = vsel %vm667_vm1, %v662_v24, %v664_v25  ;;  %v681_v36 = vld [vmem:[#allocation3 + $0x8] sm:$0xff] }
 0x163   : > { %v669_v28 = vsel %vm667_vm1, %v664_v25, %v666_v26  ;;  %672 = vst [vmem:[#allocation3 + $0x40] sm:$0xf] %v668_v27  ;;  %v682_v37 = vld [vmem:[#allocation3 + $0x20] sm:$0xff] }
 0x164   : > { %673 = vst [vmem:[#allocation3 + $0x38] sm:$0xf] %v669_v28 }
 0x169   : > { %v388_v30 = vpop.permute.xlu0 %387 }
 0x16a   : > { %v390_v31 = vpop.permute.xlu1 %389  ;;  %v392_v32 = vsel %vm391_vm3, %v386_v29, %v388_v30  ;;  %v683_v33 = vld [vmem:[#allocation3 + $0x40] sm:$0xf] }
 0x16b   : > { %v393_v34 = vsel %vm391_vm3, %v388_v30, %v390_v31  ;;  %396 = vst [vmem:[#allocation3 + $0x30] sm:$0xf0] %v392_v32  ;;  %916 = vmatpush.msk.msra.mxu0 %vm346_vm0, %v683_v33  ;;  %v684_v35 = vld [vmem:[#allocation3 + $0x38] sm:$0xf] }
 0x16c   : > { %397 = vst [vmem:[#allocation3] sm:$0xf0] %v393_v34  ;;  %918 = vmatpush.msk.msra.mxu1 %vm346_vm0, %v684_v35 }
 0x16d   : > { %707 = vmatpush.msra.mxu0 %v681_v36 }
 0x16e   : > { %727 = vmatpush.msra.mxu1 %v682_v37 }
 0x16f   : > { %708 = vmatpush.msra.mxu0 %v679_v38 }
 0x170   : > { %728 = vmatpush.msra.mxu1 %v680_v39 }
 0x171   : > { %709 = vmatpush.msra.mxu0 %v677_v40 }
 0x172   : > { %729 = vmatpush.msra.mxu1 %v678_v41  ;;  %v675_v43 = vld [vmem:[#allocation3 + $0x30] sm:$0xff] }
 0x173   : > { %710 = vmatpush.msra.mxu0 %v675_v43  ;;  %v676_v44 = vld [vmem:[#allocation3] sm:$0xff] }
 0x174   : > { %730 = vmatpush.msra.mxu1 %v676_v44  ;;  %917 = vmatmul.msk.f32.vlgmr.msra.gmra.mxu0 %vm685_vm4, %v674_v42 }
 0x175   : > { %919 = vmatmul.msk.f32.vlgmr.msra.gmra.mxu1 %vm685_vm4, %v674_v42 }
 0x1f1   : > { %v712_v45 = vpop.f32.mrf.mxu0 }
 0x1f2   : > { %735 = vst [vmem:[%s314_s9] sm:$0xff] %v712_v45  ;;  %v741_v47 = vmul.f32 %v712_v45, %v712_v45  ;;  %v732_v48 = vpop.f32.mrf.mxu1 }
 0x1f3   : > { %736 = vst [vmem:[%s314_s9 + $0x8] sm:$0xff] %v732_v48  ;;  %v742_v49 = vmul.f32 %v732_v48, %v732_v48  ;;  %v737_v50 = vadd.f32 %v732_v48, %v712_v45 }
 0x1f4   : > { %1091 = shalt.err (!%p1088_p9)
}
 0x1f5   : > { %935 = dma.vmem_to_hbm [thread:$0]  (%p1255_p0), %s770_s10, 256, %s772_s11, %s748_s12   ;;  %738 = vadd.xlane.f32.xlu2 %v737_v50  ;;  %v743_v51 = vadd.f32 %v742_v49, %v741_v47 }
 0x1f6   : > { %p327_p10 = scmp.lt.s32.totalorder %s1219_s29, 1 }
 0x1f7   : > { %744 = vadd.xlane.f32.xlu0 %v743_v51 }
 0x1f8   : > { %s1404_s29 = smov (!%p327_p10, %s1219_s29), 1 }
 0x1f9   : > { %s914_s19 = sshll.u32 %s1404_s29, 3 }
 0x1fa   : > { %s330_s17 = scalar_lea.vmem %s1387_s6, %s914_s19  ;;  %s334_s8 = scalar_lea.vmem %s1388_s7, %s914_s19 }
 0x268   : > { %v739_v52 = vpop.xlane.xlu2 %738 }
 0x269   : > { %740 = vst.msk [vmem:[%s330_s17] sm:$0xff] %vm370_vm2, %v739_v52 }
 0x26a   : > { %v745_v53 = vpop.xlane.xlu0 %744 }
 0x26b   : > { %746 = vst.msk [vmem:[%s334_s8] sm:$0xff] %vm370_vm2, %v745_v53 }
 0x26c PF: > { %s789_s18 = sand.u32 1, %s1122_s24   ;;  %p1397_p0 = scmp.ge.s32.totalorder %s1134_s4, 2 }
 0x26d   : > { %s790_s29 = scalar_lea.sflag [#allocation6], %s789_s18 }
 0x26e   : > { %p946_p11 = pnand %p1397_p0, %p1261_p6 }
 0x270   : > { %p947_p12 = pneg %p946_p11 }
 0x272   : > { %1117 = dma.done.wait (%p947_p12), %s790_s29, 256  }
 0x273   : > { %1119 = vsyncadd (%p947_p12), %s790_s29, 4294967040  ;;  %s1398_s9 = sld [smem:[#allocation13_spill]]  ;;  %p22_p2 = scmp.ge.s32.totalorder %s1235_s13, 4  }
 0x274   : > { %s1399_s24 = smov %s1126_s3  ;;  %s1400_s3 = smov %s1130_s25 }
 0x275   : > { %s1402_s4 = smov %s1235_s13  ;;  %24 = sbr.rel (!%p22_p2) target bundleno = 8 (0x8), region = 133 }
 0x279   : > { %s1401_s25 = smov %s1398_s9 }
 0x27a   :  { %810 = vsyncpa [#allocation5], 1 }
 0x27b   :  { %812 = vsyncpa [#allocation5 + $0x1], 1 }
 0x27c   :  { %813 = vsyncpa [#allocation8], 1 }
 0x27d   :  { %814 = vsyncpa [#allocation6], 1 }
 0x27e   :  { %816 = vsyncpa [#allocation6 + $0x1], 1 }

</bundles_post_ra>
